<compile_context>
chip_gen: v5e
topology: v5e:2x2
jax: 0.10.0
libtpu: 0.0.40
codegen_flags: <defaults>
</compile_context>

<pallas_src>
import jax
import jax.numpy as jnp
from jax import lax
from jax.experimental import pallas as pl
from jax.experimental.pallas import tpu as pltpu

LANE = 128


def _round_up(x, m):
    return ((x + m - 1) // m) * m


def _pad_to(a, shape, dtype=None):
    pads = [(0, s - d) for d, s in zip(a.shape, shape)]
    out = jnp.pad(a, pads)
    return out if dtype is None else out.astype(dtype)


def _pad_fc6_weight(w1, PP, C, pp_pad, c_pad, hidden_p):
    """Pad a (PP*C, hidden) fc6 weight (pixel-major rows) to the padded
    (PP_pad*C_pad, hidden_p) layout used by the kernels."""
    h = w1.shape[1]
    w3 = w1.reshape(PP, C, h)
    w3 = jnp.pad(w3, ((0, pp_pad - PP), (0, c_pad - C), (0, hidden_p - h)))
    return w3.reshape(pp_pad * c_pad, hidden_p).astype(jnp.bfloat16)


def _tpu_budget():
    """Generation-dependent VMEM budget + row-tile cap.
    v5e/v6e: 128 MiB VMEM -> 96 MiB limit, 512-row tiles.
    v7x: 64 MiB per TensorCore -> 48 MiB limit, 256-row tiles."""
    cap = 64 * 1024 * 1024
    try:
        info = pltpu.get_tpu_info()
        cap = getattr(info, "vmem_capacity_bytes", cap) or cap
    except Exception:
        pass
    if cap >= 128 * 1024 * 1024:
        return 96 * 1024 * 1024, 512
    return 48 * 1024 * 1024, 256


def _row_tiling(rows, cap):
    """Row tile (multiple of 16 for bf16 sublane packing) and padded row count.
    Splits a single-tile workload in two so both v7x TensorCores get work."""
    rows16 = _round_up(max(rows, 1), 16)
    tm = min(cap, rows16)
    if rows16 == tm and tm >= 64:
        tm = _round_up(tm // 2, 16)
    rows_p = _round_up(rows16, tm)
    return tm, rows_p


# ---------------------------------------------------------------------------
# Pallas kernel 1: ROIAlign via per-box interpolation matrix on the MXU.
#   grid = (row_tiles [parallel]); scalar-prefetched per-box image indices.
#   pooled[b] = interp_b[PP_pad, HW_pad] @ feat[img_b][HW_pad, C_pad]
#   interp_b is built in-kernel from 4 one-hot corner terms (no gathers).
# ---------------------------------------------------------------------------

def _roi_align_kernel(bimg_ref, bidx_ref, bw_ref, feat_ref, pooled_ref):
    i = pl.program_id(0)
    tm = pooled_ref.shape[0]
    pp_pad = pooled_ref.shape[1]
    hw_pad = feat_ref.shape[1]

    @pl.loop(0, tm)
    def _(b):
        img = bimg_ref[i * tm + b]                    # SMEM scalar (prefetched)
        fm = feat_ref[img]                            # [HW_pad, C_pad] bf16
        idx = bidx_ref[b]                             # [PP_pad, 4] int32
        wts = bw_ref[b]                               # [PP_pad, 4] f32
        iota_hw = lax.broadcasted_iota(jnp.int32, (pp_pad, hw_pad), 1)
        interp = jnp.zeros((pp_pad, hw_pad), jnp.float32)
        for c in range(4):                            # 4 bilinear corners
            interp = interp + jnp.where(idx[:, c:c + 1] == iota_hw,
                                        wts[:, c:c + 1], 0.0)
        pooled = jnp.dot(interp.astype(jnp.bfloat16), fm,
                         preferred_element_type=jnp.float32)
        pooled_ref[b] = pooled.astype(pooled_ref.dtype)


def roi_align_pallas(feat_cl, bidx, bwts, bimg, *, row_tile, pp_pad, c_pad,
                     vmem_limit):
    rows_p = bidx.shape[0]
    n_img, hw_pad, _ = feat_cl.shape
    grid = (rows_p // row_tile,)
    # TODO(synk): very large / multi-level FPN feature maps would need the HW
    # contraction tiled (or the maps streamed) instead of one resident block.
    return pl.pallas_call(
        _roi_align_kernel,
        out_shape=jax.ShapeDtypeStruct((rows_p, pp_pad, c_pad), jnp.bfloat16),
        grid_spec=pltpu.PrefetchScalarGridSpec(
            num_scalar_prefetch=1,
            grid=grid,
            in_specs=[
                pl.BlockSpec((row_tile, pp_pad, 4), lambda i, *_: (i, 0, 0)),
                pl.BlockSpec((row_tile, pp_pad, 4), lambda i, *_: (i, 0, 0)),
                pl.BlockSpec((n_img, hw_pad, c_pad), lambda i, *_: (0, 0, 0)),
            ],
            out_specs=pl.BlockSpec((row_tile, pp_pad, c_pad),
                                   lambda i, *_: (i, 0, 0)),
        ),
        compiler_params=pltpu.CompilerParams(
            dimension_semantics=("parallel",),
            vmem_limit_bytes=vmem_limit,
        ),
    )(bimg, bidx, bwts, feat_cl)


# ---------------------------------------------------------------------------
# Pallas kernel 2: box feature extractor MLP (fc6/ReLU/fc7/ReLU) fused with the
# predictor's object-refinement classifier.  grid = (row_tiles [parallel]);
# full-K tiles, weights VMEM-resident (constant index_map), bf16 feature out.
# ---------------------------------------------------------------------------

def _box_head_kernel(x_ref, w1_ref, b1_ref, w2_ref, b2_ref, wcls_ref, bcls_ref,
                     feat_ref, logit_ref):
    h = jnp.dot(x_ref[...], w1_ref[...], preferred_element_type=jnp.float32)
    h = jnp.maximum(h + b1_ref[...], 0.0)                                # fc6
    f = jnp.dot(h.astype(w2_ref.dtype), w2_ref[...],
                preferred_element_type=jnp.float32)
    f = jnp.maximum(f + b2_ref[...], 0.0)                                # fc7
    feat_ref[...] = f.astype(feat_ref.dtype)                             # bf16
    logit_ref[...] = (jnp.dot(f.astype(wcls_ref.dtype), wcls_ref[...],
                              preferred_element_type=jnp.float32)
                      + bcls_ref[...])                                   # refine


def box_head(pooled_flat, w1, b1, w2, b2, wcls, bcls, *, P, C, pp_pad, c_pad,
             hidden_p, n_cls_p, row_tile, vmem_limit):
    rows_p, d_in_p = pooled_flat.shape
    w1p = _pad_fc6_weight(w1, P * P, C, pp_pad, c_pad, hidden_p)
    b1p = _pad_to(b1, (1, hidden_p))
    w2p = _pad_to(w2, (hidden_p, hidden_p), jnp.bfloat16)
    b2p = _pad_to(b2, (1, hidden_p))
    wclsp = _pad_to(wcls, (hidden_p, n_cls_p), jnp.bfloat16)
    bclsp = _pad_to(bcls, (1, n_cls_p))
    grid = (rows_p // row_tile,)
    feats, logits = pl.pallas_call(
        _box_head_kernel,
        out_shape=(jax.ShapeDtypeStruct((rows_p, hidden_p), jnp.bfloat16),
                   jax.ShapeDtypeStruct((rows_p, n_cls_p), jnp.float32)),
        grid_spec=pltpu.PrefetchScalarGridSpec(
            num_scalar_prefetch=0,
            grid=grid,
            in_specs=[
                pl.BlockSpec((row_tile, d_in_p), lambda i: (i, 0)),
                pl.BlockSpec((d_in_p, hidden_p), lambda i: (0, 0)),
                pl.BlockSpec((1, hidden_p), lambda i: (0, 0)),
                pl.BlockSpec((hidden_p, hidden_p), lambda i: (0, 0)),
                pl.BlockSpec((1, hidden_p), lambda i: (0, 0)),
                pl.BlockSpec((hidden_p, n_cls_p), lambda i: (0, 0)),
                pl.BlockSpec((1, n_cls_p), lambda i: (0, 0)),
            ],
            out_specs=(
                pl.BlockSpec((row_tile, hidden_p), lambda i: (i, 0)),
                pl.BlockSpec((row_tile, n_cls_p), lambda i: (i, 0)),
            ),
        ),
        compiler_params=pltpu.CompilerParams(
            dimension_semantics=("parallel",),
            vmem_limit_bytes=vmem_limit,
        ),
    )(pooled_flat, w1p, b1p, w2p, b2p, wclsp, bclsp)
    return feats, logits


# ---------------------------------------------------------------------------
# Pallas kernel 3: union feature MLP fused with the relation predictor.
#   * in-kernel sub/obj gather: one-hot matmuls against the VMEM-resident
#     roi-feature table (no [num_pairs, hidden] HBM arrays),
#   * single K=2*hidden pair projection ([sub|obj] concat, Wps stacked on Wpo),
#   * union-feature gating (use_union_box) + relation classifier.
# ---------------------------------------------------------------------------

def _pair_head_kernel(ux_ref, uw1_ref, ub1_ref, uw2_ref, ub2_ref,
                      feats_ref, pidx_ref, wpair_ref, bpair_ref,
                      wrel_ref, brel_ref, rel_ref):
    # union fc6 / fc7 (bf16 MXU, f32 epilogue math)
    u = jnp.dot(ux_ref[...], uw1_ref[...], preferred_element_type=jnp.float32)
    u = jnp.maximum(u + ub1_ref[...], 0.0)
    u = jnp.dot(u.astype(uw2_ref.dtype), uw2_ref[...],
                preferred_element_type=jnp.float32)
    u = jnp.maximum(u + ub2_ref[...], 0.0)

    # one-hot gather of subject / object features (MXU, exact selection)
    tm = rel_ref.shape[0]
    r_pad = feats_ref.shape[0]
    idx = pidx_ref[...]                                     # [tm, 2] int32
    iota_r = lax.broadcasted_iota(jnp.int32, (tm, r_pad), 1)
    feats = feats_ref[...]                                  # [R_pad, hidden_p] bf16
    sub = jnp.dot((idx[:, 0:1] == iota_r).astype(feats.dtype), feats,
                  preferred_element_type=jnp.float32)
    obj = jnp.dot((idx[:, 1:2] == iota_r).astype(feats.dtype), feats,
                  preferred_element_type=jnp.float32)

    # fused pair projection (single K = 2*hidden matmul) + union gating
    pair_in = jnp.concatenate([sub, obj], axis=1).astype(wpair_ref.dtype)
    h = jnp.dot(pair_in, wpair_ref[...], preferred_element_type=jnp.float32)
    h = jnp.maximum(h + bpair_ref[...], 0.0) * u            # use_union_box
    rel_ref[...] = (jnp.dot(h.astype(wrel_ref.dtype), wrel_ref[...],
                            preferred_element_type=jnp.float32)
                    + brel_ref[...])


def pair_head(union_flat, roi_feats, pair_idx,
              uw1, ub1, uw2, ub2, wps, wpo, bp, wrel, brel,
              *, P, C, pp_pad, c_pad, hidden_p, n_rel_p, row_tile, vmem_limit):
    np_p, d_in_p = union_flat.shape
    r_pad, _ = roi_feats.shape
    uw1p = _pad_fc6_weight(uw1, P * P, C, pp_pad, c_pad, hidden_p)
    ub1p = _pad_to(ub1, (1, hidden_p))
    uw2p = _pad_to(uw2, (hidden_p, hidden_p), jnp.bfloat16)
    ub2p = _pad_to(ub2, (1, hidden_p))
    wpairp = jnp.concatenate(
        [_pad_to(wps, (hidden_p, hidden_p)), _pad_to(wpo, (hidden_p, hidden_p))],
        axis=0).astype(jnp.bfloat16)                          # [2*hidden_p, hidden_p]
    bpp = _pad_to(bp, (1, hidden_p))
    wrelp = _pad_to(wrel, (hidden_p, n_rel_p), jnp.bfloat16)
    brelp = _pad_to(brel, (1, n_rel_p))
    grid = (np_p // row_tile,)
    rel = pl.pallas_call(
        _pair_head_kernel,
        out_shape=jax.ShapeDtypeStruct((np_p, n_rel_p), jnp.float32),
        grid_spec=pltpu.PrefetchScalarGridSpec(
            num_scalar_prefetch=0,
            grid=grid,
            in_specs=[
                pl.BlockSpec((row_tile, d_in_p), lambda i: (i, 0)),
                pl.BlockSpec((d_in_p, hidden_p), lambda i: (0, 0)),
                pl.BlockSpec((1, hidden_p), lambda i: (0, 0)),
                pl.BlockSpec((hidden_p, hidden_p), lambda i: (0, 0)),
                pl.BlockSpec((1, hidden_p), lambda i: (0, 0)),
                pl.BlockSpec((r_pad, hidden_p), lambda i: (0, 0)),
                pl.BlockSpec((row_tile, 2), lambda i: (i, 0)),
                pl.BlockSpec((2 * hidden_p, hidden_p), lambda i: (0, 0)),
                pl.BlockSpec((1, hidden_p), lambda i: (0, 0)),
                pl.BlockSpec((hidden_p, n_rel_p), lambda i: (0, 0)),
                pl.BlockSpec((1, n_rel_p), lambda i: (0, 0)),
            ],
            out_specs=pl.BlockSpec((row_tile, n_rel_p), lambda i: (i, 0)),
        ),
        compiler_params=pltpu.CompilerParams(
            dimension_semantics=("parallel",),
            vmem_limit_bytes=vmem_limit,
        ),
    )(union_flat, uw1p, ub1p, uw2p, ub2p, roi_feats, pair_idx,
      wpairp, bpp, wrelp, brelp)
    return rel


# ---------------------------------------------------------------------------
# Glue: bilinear corner data, pair construction, post-processing
# ---------------------------------------------------------------------------

def _bilinear_corner_data(boxes, box_to_img, P, H, W, rows_p, pp_pad):
    """Per-box bilinear corner indices/weights (sampling_ratio=1), padded.
    TODO(synk): spatial_scale folded to 1.0 and no aligned=True half-pixel
    offset, matching the simplification of the previous version."""
    R = boxes.shape[0]
    PP = P * P
    x1, y1, x2, y2 = boxes[:, 0], boxes[:, 1], boxes[:, 2], boxes[:, 3]
    bw = jnp.maximum(x2 - x1, 1.0)
    bh = jnp.maximum(y2 - y1, 1.0)
    steps = (jnp.arange(P, dtype=jnp.float32) + 0.5) / P
    ys = y1[:, None] + steps[None, :] * bh[:, None]          # [R, P]
    xs = x1[:, None] + steps[None, :] * bw[:, None]          # [R, P]
    yy = jnp.broadcast_to(ys[:, :, None], (R, P, P)).reshape(R, PP)
    xx = jnp.broadcast_to(xs[:, None, :], (R, P, P)).reshape(R, PP)
    y0 = jnp.clip(jnp.floor(yy), 0.0, H - 1.0)
    x0 = jnp.clip(jnp.floor(xx), 0.0, W - 1.0)
    y1i = jnp.clip(y0 + 1.0, 0.0, H - 1.0)
    x1i = jnp.clip(x0 + 1.0, 0.0, W - 1.0)
    ly = jnp.clip(yy - y0, 0.0, 1.0)
    lx = jnp.clip(xx - x0, 0.0, 1.0)
    w00 = (1.0 - ly) * (1.0 - lx)
    w01 = (1.0 - ly) * lx
    w10 = ly * (1.0 - lx)
    w11 = ly * lx

    def flat(yv, xv):
        return yv.astype(jnp.int32) * W + xv.astype(jnp.int32)

    bidx = jnp.stack([flat(y0, x0), flat(y0, x1i), flat(y1i, x0), flat(y1i, x1i)],
                     axis=-1)                                # [R, PP, 4] int32
    bwts = jnp.stack([w00, w01, w10, w11], axis=-1)          # [R, PP, 4] f32
    bidx = jnp.pad(bidx, ((0, rows_p - R), (0, pp_pad - PP), (0, 0)))
    bwts = jnp.pad(bwts, ((0, rows_p - R), (0, pp_pad - PP), (0, 0)))
    bimg = jnp.pad(box_to_img.astype(jnp.int32), (0, rows_p - R))
    return bidx.astype(jnp.int32), bwts.astype(jnp.float32), bimg


def prepare_test_pairs(boxes_per_image):
    """samp_processor.prepare_test_pairs: all ordered pairs (i != j) per image,
    with global box indices.
    TODO(synk): trace-time Python loop -> retrace when boxes_per_image changes."""
    pairs = []
    offset = 0
    for nb in boxes_per_image:
        for i in range(nb):
            for j in range(nb):
                if i != j:
                    pairs.append((offset + i, offset + j))
        offset += nb
    return jnp.asarray(pairs, dtype=jnp.int32)               # [num_pairs, 2]


# ---------------------------------------------------------------------------
# Full forward (inference mode)
# ---------------------------------------------------------------------------

def roi_relation_head_forward(features, boxes, box_to_img, boxes_per_image, params):
    P = params["pool_size"]
    hidden = params["hidden"]
    n_obj_cls = params["n_obj_cls"]
    n_rel_cls = params["n_rel_cls"]

    N, C, H, W = features.shape
    PP = P * P
    vmem_limit, row_cap = _tpu_budget()
    hidden_p = _round_up(hidden, LANE)
    n_obj_p = _round_up(n_obj_cls, LANE)
    n_rel_p = _round_up(n_rel_cls, LANE)
    c_pad = _round_up(C, LANE)
    pp_pad = _round_up(PP, 16)
    hw_pad = _round_up(H * W, 16)
    d_in_p = pp_pad * c_pad

    # channels-last flattened bf16 feature maps, lane-padded (done once).
    feat_cl = jnp.transpose(features, (0, 2, 3, 1)).reshape(N, H * W, C)
    feat_cl = jnp.pad(feat_cl, ((0, 0), (0, hw_pad - H * W), (0, c_pad - C))
                      ).astype(jnp.bfloat16)

    # 1. subject-object pairs (testing path)
    rel_pair_idxs = prepare_test_pairs(boxes_per_image)
    num_pairs = rel_pair_idxs.shape[0]
    sub_idx = rel_pair_idxs[:, 0]
    obj_idx = rel_pair_idxs[:, 1]

    # 2a. box ROIAlign (Pallas MXU interpolation matmul) -> box MLP + refine cls
    R = boxes.shape[0]
    tm_box, rows_p = _row_tiling(R, row_cap)
    bidx, bwts, bimg = _bilinear_corner_data(boxes, box_to_img, P, H, W,
                                             rows_p, pp_pad)
    box_pooled = roi_align_pallas(feat_cl, bidx, bwts, bimg, row_tile=tm_box,
                                  pp_pad=pp_pad, c_pad=c_pad,
                                  vmem_limit=vmem_limit)     # [rows_p, PP_pad, C_pad] bf16
    box_flat = box_pooled.reshape(rows_p, d_in_p)            # free trailing-dim collapse
    roi_feats_b, refine_logits_p = box_head(
        box_flat,
        params["box_w1"], params["box_b1"], params["box_w2"], params["box_b2"],
        params["w_cls"], params["b_cls"],
        P=P, C=C, pp_pad=pp_pad, c_pad=c_pad,
        hidden_p=hidden_p, n_cls_p=n_obj_p,
        row_tile=tm_box, vmem_limit=vmem_limit)              # bf16 feats, f32 logits

    # 2b. union boxes + union ROIAlign (same Pallas kernel, bf16 direct output)
    sub_boxes = boxes[sub_idx]
    obj_boxes = boxes[obj_idx]
    union_boxes = jnp.concatenate(
        [jnp.minimum(sub_boxes[:, :2], obj_boxes[:, :2]),
         jnp.maximum(sub_boxes[:, 2:], obj_boxes[:, 2:])], axis=-1)
    union_img = box_to_img[sub_idx]
    tm_pair, np_p = _row_tiling(num_pairs, row_cap)
    uidx, uwts, uimg = _bilinear_corner_data(union_boxes, union_img, P, H, W,
                                             np_p, pp_pad)
    union_pooled = roi_align_pallas(feat_cl, uidx, uwts, uimg, row_tile=tm_pair,
                                    pp_pad=pp_pad, c_pad=c_pad,
                                    vmem_limit=vmem_limit)
    union_flat = union_pooled.reshape(np_p, d_in_p)
    # TODO(synk): real RelationFeatureExtractor also adds rect_conv(spatial
    # masks) to the pooled union features before the MLP; omitted here.

    # 3. relation predictor: union MLP + in-kernel sub/obj gather + pair fusion
    pair_idx_p = jnp.pad(rel_pair_idxs, ((0, np_p - num_pairs), (0, 0)))
    relation_logits_p = pair_head(
        union_flat, roi_feats_b, pair_idx_p,
        params["uni_w1"], params["uni_b1"], params["uni_w2"], params["uni_b2"],
        params["w_pair_s"], params["w_pair_o"], params["b_pair"],
        params["w_rel"], params["b_rel"],
        P=P, C=C, pp_pad=pp_pad, c_pad=c_pad,
        hidden_p=hidden_p, n_rel_p=n_rel_p,
        row_tile=tm_pair, vmem_limit=vmem_limit)             # [np_p, n_rel_p] f32

    # slice padded rows / lanes back to logical sizes
    roi_features = roi_feats_b[:R, :hidden].astype(jnp.float32)
    refine_logits = refine_logits_p[:R, :n_obj_cls]
    relation_logits = relation_logits_p[:num_pairs, :n_rel_cls]

    # 4. post_processor (testing): softmax scores
    # TODO(synk): full PostProcessor builds BoxList results with triplet ranking;
    # here we only return the softmax-normalized distributions.
    obj_probs = jax.nn.softmax(refine_logits, axis=-1)
    rel_probs = jax.nn.softmax(relation_logits, axis=-1)
    result = {
        "rel_pair_idxs": rel_pair_idxs,
        "obj_probs": obj_probs,
        "rel_probs": rel_probs,
    }
    return roi_features, result, {}


# ---------------------------------------------------------------------------
# Parameter init + example run
# ---------------------------------------------------------------------------

def make_params(key, in_channels, pool_size, hidden, n_obj_cls, n_rel_cls):
    # NOTE: fc6 weight rows are interpreted in pixel-major order
    # (row = (p*P + q) * C + c), consistent with the kernels' pooled layout.
    d_in = in_channels * pool_size * pool_size
    ks = jax.random.split(key, 8)

    def w(k, shape):
        return (jax.random.normal(k, shape, jnp.float32) * 0.02).astype(jnp.float32)

    def b(shape):
        return jnp.zeros(shape, jnp.float32)

    return {
        "pool_size": pool_size,
        "hidden": hidden,
        "n_obj_cls": n_obj_cls,
        "n_rel_cls": n_rel_cls,
        # box feature extractor MLP
        "box_w1": w(ks[0], (d_in, hidden)), "box_b1": b((1, hidden)),
        "box_w2": w(ks[1], (hidden, hidden)), "box_b2": b((1, hidden)),
        # union feature extractor MLP
        "uni_w1": w(ks[2], (d_in, hidden)), "uni_b1": b((1, hidden)),
        "uni_w2": w(ks[3], (hidden, hidden)), "uni_b2": b((1, hidden)),
        # predictor
        "w_cls": w(ks[4], (hidden, n_obj_cls)), "b_cls": b((1, n_obj_cls)),
        "w_pair_s": w(ks[5], (hidden, hidden)),
        "w_pair_o": w(ks[6], (hidden, hidden)),
        "b_pair": b((1, hidden)),
        "w_rel": w(ks[7], (hidden, n_rel_cls)), "b_rel": b((1, n_rel_cls)),
    }


if __name__ == "__main__":
    key = jax.random.PRNGKey(0)
    k_feat, k_box, k_param = jax.random.split(key, 3)

    # Small synthetic shapes
    N, C, H, W = 2, 4, 16, 16          # feature maps, NCHW
    boxes_per_image = [4, 4]           # proposals per image
    POOL, HIDDEN = 7, 64
    N_OBJ_CLS, N_REL_CLS = 16, 8

    features = jax.random.normal(k_feat, (N, C, H, W), jnp.float32)

    # deterministic xyxy boxes inside the 16x16 feature map
    R = sum(boxes_per_image)
    raw = jax.random.uniform(k_box, (R, 4), jnp.float32, 0.0, float(W - 1))
    x1 = jnp.minimum(raw[:, 0], raw[:, 2])
    x2 = jnp.maximum(raw[:, 0], raw[:, 2]) + 1.0
    y1 = jnp.minimum(raw[:, 1], raw[:, 3])
    y2 = jnp.maximum(raw[:, 1], raw[:, 3]) + 1.0
    boxes = jnp.stack([x1, y1, x2, y2], axis=-1)
    box_to_img = jnp.asarray([0, 0, 0, 0, 1, 1, 1, 1], jnp.int32)

    params = make_params(k_param, C, POOL, HIDDEN, N_OBJ_CLS, N_REL_CLS)

    roi_features, result, losses = roi_relation_head_forward(
        features, boxes, box_to_img, boxes_per_image, params)

    jax.block_until_ready(roi_features)
    jax.block_until_ready(result["rel_probs"])

    num_pairs = sum(nb * (nb - 1) for nb in boxes_per_image)
    assert roi_features.shape == (R, HIDDEN)
    assert result["obj_probs"].shape == (R, N_OBJ_CLS)
    assert result["rel_probs"].shape == (num_pairs, N_REL_CLS)
    assert bool(jnp.all(jnp.isfinite(roi_features)))
    assert bool(jnp.all(jnp.isfinite(result["obj_probs"])))
    assert bool(jnp.all(jnp.isfinite(result["rel_probs"])))
    assert losses == {}

    print("KERNEL_OK")
</pallas_src>

<mosaic_0001>
module attributes {stable_mosaic.version = 11 : i64} {
  func.func @_roi_align_kernel(%arg0: i32, %arg1: memref<16xi32, #tpu.memory_space<smem>>, %arg2: memref<16x64x4xi32, #tpu.memory_space<vmem>>, %arg3: memref<16x64x4xf32, #tpu.memory_space<vmem>>, %arg4: memref<2x256x128xbf16, #tpu.memory_space<vmem>>, %arg5: memref<16x64x128xbf16, #tpu.memory_space<vmem>>) attributes {dimension_semantics = [#tpu.dimension_semantics<parallel>], iteration_bounds = array<i64: 1>, scalar_prefetch = 1 : i64, scratch_operands = 0 : i64, tpu.core_type = #tpu.core_type<tc>, window_params = [{transform_indices = @transform_0, window_bounds = array<i64: 16, 64, 4>}, {transform_indices = @transform_1, window_bounds = array<i64: 16, 64, 4>}, {pipeline_mode = #tpu.pipeline_mode<synchronous>, transform_indices = @transform_2, window_bounds = array<i64: 2, 256, 128>}, {transform_indices = @transform_3, window_bounds = array<i64: 16, 64, 128>}]} {
    %c0_i32 = arith.constant 0 : i32
    %c16_i32 = arith.constant 16 : i32
    %0 = arith.addi %c0_i32, %c16_i32 : i32
    %c1_i32 = arith.constant 1 : i32
    scf.for %arg6 = %c0_i32 to %0 step %c1_i32  : i32 {
      %c1_i32_1 = arith.constant 1 : i32
      %1 = arith.muli %arg6, %c1_i32_1 : i32
      %c0_i32_2 = arith.constant 0 : i32
      %2 = arith.addi %c0_i32_2, %1 : i32
      %c16_i32_3 = arith.constant 16 : i32
      %3 = arith.muli %arg0, %c16_i32_3 : i32
      %4 = arith.addi %3, %2 : i32
      %5 = arith.index_cast %4 : i32 to index
      %6 = memref.load %arg1[%5] : memref<16xi32, #tpu.memory_space<smem>>
      %7 = arith.index_cast %6 : i32 to index
      %c0 = arith.constant 0 : index
      %c0_4 = arith.constant 0 : index
      %8 = vector.load %arg4[%7, %c0, %c0_4] : memref<2x256x128xbf16, #tpu.memory_space<vmem>>, vector<1x256x128xbf16>
      %9 = vector.shape_cast %8 : vector<1x256x128xbf16> to vector<256x128xbf16>
      %10 = arith.index_cast %2 : i32 to index
      %c0_5 = arith.constant 0 : index
      %c0_6 = arith.constant 0 : index
      %11 = vector.load %arg2[%10, %c0_5, %c0_6] : memref<16x64x4xi32, #tpu.memory_space<vmem>>, vector<1x64x4xi32>
      %12 = vector.shape_cast %11 : vector<1x64x4xi32> to vector<64x4xi32>
      %13 = arith.index_cast %2 : i32 to index
      %c0_7 = arith.constant 0 : index
      %c0_8 = arith.constant 0 : index
      %14 = vector.load %arg3[%13, %c0_7, %c0_8] : memref<16x64x4xf32, #tpu.memory_space<vmem>>, vector<1x64x4xf32>
      %15 = vector.shape_cast %14 : vector<1x64x4xf32> to vector<64x4xf32>
      %16 = tpu.iota {dimensions = array<i32: 1>} : vector<64x256xi32>
      %cst = arith.constant 0.000000e+00 : f32
      %17 = vector.broadcast %cst : f32 to vector<64x256xf32>
      %18 = vector.extract_strided_slice %12 {offsets = [0, 0], sizes = [64, 1], strides = [1, 1]} : vector<64x4xi32> to vector<64x1xi32>
      %19 = vector.broadcast %18 : vector<64x1xi32> to vector<64x256xi32>
      %20 = arith.cmpi eq, %19, %16 : vector<64x256xi32>
      %21 = vector.extract_strided_slice %15 {offsets = [0, 0], sizes = [64, 1], strides = [1, 1]} : vector<64x4xf32> to vector<64x1xf32>
      %cst_9 = arith.constant 0.000000e+00 : f32
      %22 = vector.shape_cast %21 : vector<64x1xf32> to vector<64x1xf32>
      %23 = vector.broadcast %22 : vector<64x1xf32> to vector<64x256xf32>
      %24 = vector.broadcast %cst_9 : f32 to vector<64x256xf32>
      %25 = arith.select %20, %23, %24 : vector<64x256xi1>, vector<64x256xf32>
      %26 = arith.addf %17, %25 : vector<64x256xf32>
      %27 = vector.extract_strided_slice %12 {offsets = [0, 1], sizes = [64, 1], strides = [1, 1]} : vector<64x4xi32> to vector<64x1xi32>
      %28 = vector.broadcast %27 : vector<64x1xi32> to vector<64x256xi32>
      %29 = arith.cmpi eq, %28, %16 : vector<64x256xi32>
      %30 = vector.extract_strided_slice %15 {offsets = [0, 1], sizes = [64, 1], strides = [1, 1]} : vector<64x4xf32> to vector<64x1xf32>
      %cst_10 = arith.constant 0.000000e+00 : f32
      %31 = vector.shape_cast %30 : vector<64x1xf32> to vector<64x1xf32>
      %32 = vector.broadcast %31 : vector<64x1xf32> to vector<64x256xf32>
      %33 = vector.broadcast %cst_10 : f32 to vector<64x256xf32>
      %34 = arith.select %29, %32, %33 : vector<64x256xi1>, vector<64x256xf32>
      %35 = arith.addf %26, %34 : vector<64x256xf32>
      %36 = vector.extract_strided_slice %12 {offsets = [0, 2], sizes = [64, 1], strides = [1, 1]} : vector<64x4xi32> to vector<64x1xi32>
      %37 = vector.broadcast %36 : vector<64x1xi32> to vector<64x256xi32>
      %38 = arith.cmpi eq, %37, %16 : vector<64x256xi32>
      %39 = vector.extract_strided_slice %15 {offsets = [0, 2], sizes = [64, 1], strides = [1, 1]} : vector<64x4xf32> to vector<64x1xf32>
      %cst_11 = arith.constant 0.000000e+00 : f32
      %40 = vector.shape_cast %39 : vector<64x1xf32> to vector<64x1xf32>
      %41 = vector.broadcast %40 : vector<64x1xf32> to vector<64x256xf32>
      %42 = vector.broadcast %cst_11 : f32 to vector<64x256xf32>
      %43 = arith.select %38, %41, %42 : vector<64x256xi1>, vector<64x256xf32>
      %44 = arith.addf %35, %43 : vector<64x256xf32>
      %45 = vector.extract_strided_slice %12 {offsets = [0, 3], sizes = [64, 1], strides = [1, 1]} : vector<64x4xi32> to vector<64x1xi32>
      %46 = vector.broadcast %45 : vector<64x1xi32> to vector<64x256xi32>
      %47 = arith.cmpi eq, %46, %16 : vector<64x256xi32>
      %48 = vector.extract_strided_slice %15 {offsets = [0, 3], sizes = [64, 1], strides = [1, 1]} : vector<64x4xf32> to vector<64x1xf32>
      %cst_12 = arith.constant 0.000000e+00 : f32
      %49 = vector.shape_cast %48 : vector<64x1xf32> to vector<64x1xf32>
      %50 = vector.broadcast %49 : vector<64x1xf32> to vector<64x256xf32>
      %51 = vector.broadcast %cst_12 : f32 to vector<64x256xf32>
      %52 = arith.select %47, %50, %51 : vector<64x256xi1>, vector<64x256xf32>
      %53 = arith.addf %44, %52 : vector<64x256xf32>
      %54 = arith.truncf %53 : vector<64x256xf32> to vector<64x256xbf16>
      %cst_13 = arith.constant dense<0.000000e+00> : vector<64x128xf32>
      %55 = tpu.matmul %54, %9, %cst_13 {dimension_numbers = #tpu.dot_dimension_numbers<[1], [0], [0], [1], [0, 0, 1, 1], [], []>} : vector<64x256xbf16>, vector<256x128xbf16>, vector<64x128xf32> -> vector<64x128xf32>
      %56 = arith.truncf %55 : vector<64x128xf32> to vector<64x128xbf16>
      %57 = arith.index_cast %2 : i32 to index
      %c0_14 = arith.constant 0 : index
      %c0_15 = arith.constant 0 : index
      %58 = vector.load %arg5[%57, %c0_14, %c0_15] : memref<16x64x128xbf16, #tpu.memory_space<vmem>>, vector<1x64x128xbf16>
      %59 = vector.shape_cast %58 : vector<1x64x128xbf16> to vector<64x128xbf16>
      %60 = vector.shape_cast %56 : vector<64x128xbf16> to vector<1x64x128xbf16>
      tpu.vector_store %arg5[%57, %c0_14, %c0_15], %60 {strides = array<i32>} : memref<16x64x128xbf16, #tpu.memory_space<vmem>>, vector<1x64x128xbf16>,
    }
    %c16_i32_0 = arith.constant 16 : i32
    return
  }
  func.func @transform_0(%arg0: i32, %arg1: memref<16xi32, #tpu.memory_space<smem>>) -> (i32, i32, i32) {
    %c0_i32 = arith.constant 0 : i32
    %c0_i32_0 = arith.constant 0 : i32
    %c0_i32_1 = arith.constant 0 : i32
    return %arg0, %c0_i32, %c0_i32_0 : i32, i32, i32
  }
  func.func @transform_1(%arg0: i32, %arg1: memref<16xi32, #tpu.memory_space<smem>>) -> (i32, i32, i32) {
    %c0_i32 = arith.constant 0 : i32
    %c0_i32_0 = arith.constant 0 : i32
    %c0_i32_1 = arith.constant 0 : i32
    return %arg0, %c0_i32, %c0_i32_0 : i32, i32, i32
  }
  func.func @transform_2(%arg0: i32, %arg1: memref<16xi32, #tpu.memory_space<smem>>) -> (i32, i32, i32) {
    %c0_i32 = arith.constant 0 : i32
    %c0_i32_0 = arith.constant 0 : i32
    %c0_i32_1 = arith.constant 0 : i32
    %c0_i32_2 = arith.constant 0 : i32
    return %c0_i32, %c0_i32_0, %c0_i32_1 : i32, i32, i32
  }
  func.func @transform_3(%arg0: i32, %arg1: memref<16xi32, #tpu.memory_space<smem>>) -> (i32, i32, i32) {
    %c0_i32 = arith.constant 0 : i32
    %c0_i32_0 = arith.constant 0 : i32
    %c0_i32_1 = arith.constant 0 : i32
    return %arg0, %c0_i32, %c0_i32_0 : i32, i32, i32
  }
}

</mosaic_0001>

<bundles_post_ra>
// kernel: tpu_custom_call.1
= control target key start
LH: loop header
LB: loop body
LE: loop exit
PB: predicated region body
PF: predicated region fallthrough
CT: control target
= control target key end

     0   :  { %s942_s18 = smov [#allocation3]   ;;  %s1305_s0 = inlined_call_operand.vmem [shape: s32[16], index: 0, kind: input, shape index: {}]   ;;  %s1306_s1 = inlined_call_operand.vmem [shape: s32[16,64,4], index: 1, kind: input, shape index: {}]   ;;  %s1307_s2 = inlined_call_operand.vmem [shape: f32[16,64,4], index: 2, kind: input, shape index: {}]   ;;  %s1308_s3 = inlined_call_operand.vmem [shape: bf16[2,256,128], index: 3, kind: input, shape index: {}]   ;;  %s1309_s4 = inlined_call_operand.hbm [shape: bf16[16,64,128], index: 4, kind: output, shape index: {}]  }
   0x1   :  { %s10_s17 = sshll.u32 %s1305_s0, 4  ;;  %s11_s17 = int_to_ptr.vmem [resolvable:$true] %s10_s17 }
   0x2   :  { %13 = dma.vmem_to_smem %s11_s17, 16, %s942_s18, [#allocation2] }
   0x3   :  { %934 = dma.done.wait [#allocation2], 16 }
   0x4   :  { %935 = vsyncadd [#allocation2], 4294967280 }
   0x5   :  { %16 = sfence }
   0x6   :  { %17 = vsyncpa [#allocation5], 0  ;;  %s978_s19 = smov 0  }
   0x7 LB: > { %v943_v0 = vmov 0   ;;  %s728_s0 = sshll.u32 %s940_s19, 6  ;;  %v944_v17 = vmov 1   ;;  %v945_v18 = vmov 2   ;;  %v946_v20 = vmov 3   ;;  %s32_s26 = sld [smem:[#allocation3 + %s940_s19]]  ;;  %s940_s19 = sphi %s978_s19, %s29_s19  }
   0x8   : > { %870 = vset.pattern.permute.xlu2 %v943_v0  ;;  %869 = vset.pattern.permute.xlu1 %v943_v0  ;;  %s69_s22 = scalar_lea.vmem %s1306_s1, %s728_s0  ;;  %s78_s25 = scalar_lea.vmem %s1307_s2, %s728_s0  ;;  %v87_v22 = vlaneseq }
   0x9   : > { %868 = vset.pattern.permute.xlu0 %v943_v0  ;;  %v74_v1 = vld [vmem:[%s69_s22 + $0x20] sm:$0xff]  ;;  %v987_v2 = vld [vmem:[%s69_s22 + $0x10] sm:$0xff]  ;;  %v75_v4 = vld [vmem:[%s69_s22 + $0x28] sm:$0xff]  ;;  %s812_s5 = sshll.u32 %s940_s19, 5  ;;  %s29_s19 = sadd.s32 1, %s940_s19  }
   0xa   : > { %v989_v3 = vld [vmem:[%s69_s22] sm:$0xff]  ;;  %103 = vperm.xlu2 %870, %v74_v1   ;;  %97 = vperm.xlu1 %869, %v987_v2   ;;  %v993_v5 = vld [vmem:[%s69_s22 + $0x18] sm:$0xff]  ;;  %v995_v6 = vld [vmem:[%s69_s22 + $0x8] sm:$0xff]  ;;  %v1050_v24 = vand.u32 127, %v87_v22  ;;  %s686_s6 = scalar_lea.vmem [#allocation4], %s812_s5  ;;  %p26_p0 = scmp.ge.s32.totalorder %s29_s19, 16  }
   0xb   : > { %91 = vperm.xlu0 %868, %v989_v3   ;;  %v1002_v7 = vld [vmem:[%s78_s25] sm:$0xff]  ;;  %v1004_v8 = vld [vmem:[%s69_s22 + $0x38] sm:$0xff]  ;;  %v1006_v9 = vld [vmem:[%s69_s22 + $0x30] sm:$0xff]  ;;  %s701_s9 = sshll.u32 (%p26_p0), %s1309_s4, 4  ;;  %s947_s10 = smov (%p26_p0), [#allocation4]   ;;  %s702_s9 = int_to_ptr.hbm [resolvable:$true] %s701_s9 }
   0xc   : > { %v1011_v10 = vld [vmem:[%s78_s25 + $0x18] sm:$0xff]  ;;  %v1013_v11 = vld [vmem:[%s78_s25 + $0x10] sm:$0xff]  ;;  %v1015_v12 = vld [vmem:[%s78_s25 + $0x8] sm:$0xff]  ;;  %v1058_v25 = vadd.s32 128, %v1050_v24  ;;  %s699_s11 = sshll.u32 (%p26_p0), %s947_s10, 4  ;;  %s948_s12 = smov (%p26_p0), 64   ;;  %s700_s11 = int_to_ptr.vmem [resolvable:$true] %s699_s11 }
   0xd   : > { %v1020_v13 = vld [vmem:[%s78_s25 + $0x30] sm:$0xff]  ;;  %v84_v14 = vld [vmem:[%s78_s25 + $0x28] sm:$0xff]  ;;  %v83_v15 = vld [vmem:[%s78_s25 + $0x20] sm:$0xff]  ;;  %s795_s27 = sshll.u32 %s32_s26, 7  ;;  %s949_s13 = smov (%p26_p0), 4  }
   0xe   : > { %v1023_v16 = vld [vmem:[%s78_s25 + $0x38] sm:$0xff]  ;;  %s1143_s30 = scalar_lea.vmem %s1308_s3, %s795_s27 }
  0x12   : > { %106 = vperm.xlu2 %870, %v75_v4   ;;  %100 = vperm.xlu1 %869, %v993_v5  }
  0x13   : > { %94 = vperm.xlu0 %868, %v995_v6  }
  0x1a   : > { %132 = vperm.xlu2 %870, %v1002_v7   ;;  %112 = vperm.xlu1 %869, %v1004_v8  }
  0x1b   : > { %109 = vperm.xlu0 %868, %v1006_v9  }
  0x22   : > { %147 = vperm.xlu2 %870, %v1011_v10   ;;  %142 = vperm.xlu1 %869, %v1013_v11  }
  0x23   : > { %137 = vperm.xlu0 %868, %v1015_v12  }
  0x2a   : > { %162 = vperm.xlu2 %870, %v1020_v13   ;;  %157 = vperm.xlu1 %869, %v84_v14  }
  0x2b   : > { %152 = vperm.xlu0 %868, %v83_v15  }
  0x32   : > { %872 = vset.pattern.permute.xlu2 %v944_v17  ;;  %871 = vset.pattern.permute.xlu1 %v944_v17 }
  0x33   : > { %167 = vperm.xlu0 %868, %v1023_v16   ;;  %206 = vperm.xlu2 %872, %v995_v6  }
  0x34   : > { %203 = vperm.xlu1 %871, %v989_v3  }
  0x3b   : > { %873 = vset.pattern.permute.xlu0 %v944_v17  ;;  %215 = vperm.xlu2 %872, %v74_v1  }
  0x3c   : > { %212 = vperm.xlu1 %871, %v993_v5   ;;  %209 = vperm.xlu0 %873, %v987_v2  }
  0x43   : > { %221 = vperm.xlu2 %872, %v1006_v9  }
  0x44   : > { %218 = vperm.xlu1 %871, %v75_v4   ;;  %224 = vperm.xlu0 %873, %v1004_v8  }
  0x4b   : > { %247 = vperm.xlu2 %872, %v1015_v12  }
  0x4c   : > { %243 = vperm.xlu1 %871, %v1002_v7   ;;  %251 = vperm.xlu0 %873, %v1013_v11  }
  0x53   : > { %259 = vperm.xlu2 %872, %v83_v15  }
  0x54   : > { %255 = vperm.xlu1 %871, %v1011_v10   ;;  %263 = vperm.xlu0 %873, %v84_v14  }
  0x5b   : > { %875 = vset.pattern.permute.xlu2 %v945_v18 }
  0x5c   : > { %874 = vset.pattern.permute.xlu1 %v945_v18  ;;  %876 = vset.pattern.permute.xlu0 %v945_v18 }
  0x5d   : > { %322 = vperm.xlu2 %875, %v75_v4   ;;  %319 = vperm.xlu1 %874, %v74_v1  }
  0x5e   : > { %363 = vperm.xlu0 %876, %v83_v15  }
  0x64   : > { %v1042_v19 = vpop.permute.xlu2 %103 }
  0x65   : > { %877 = vset.pattern.permute.xlu2 %v946_v20  ;;  %367 = vperm.xlu1 %874, %v84_v14   ;;  %vm122_vm12 = vcmp.eq.s32.totalorder %v1042_v19, %v1050_v24  ;;  %vm123_vm13 = vcmp.eq.s32.totalorder %v1042_v19, %v1058_v25 }
  0x66   : > { %325 = vperm.xlu0 %876, %v1006_v9   ;;  %423 = vperm.xlu2 %877, %v74_v1  }
  0x6c   : > { %v1046_v21 = vpop.permute.xlu2 %106 }
  0x6d   : > { %878 = vset.pattern.permute.xlu1 %v946_v20  ;;  %vm124_vm10 = vcmp.eq.s32.totalorder %v1046_v21, %v1050_v24  ;;  %vm125_vm11 = vcmp.eq.s32.totalorder %v1046_v21, %v1058_v25  ;;  %v799_v21 = vld [vmem:[%s1143_s30 + $0x18] sm:$0xff] }
  0x6e   : > { %355 = vperm.xlu0 %876, %v1013_v11   ;;  %467 = vperm.xlu2 %877, %v83_v15  }
  0x6f   : > { %426 = vperm.xlu1 %878, %v75_v4   ;;  %v811_v4 = vld [vmem:[%s1143_s30 + $0x78] sm:$0xff] }
  0x70   : > { %844 = vmatpush.bf16.msra.mxu3 %v811_v4  ;;  %647 = vmatpush.bf16.msra.mxu1 %v811_v4 }
  0x74   : > { %v133_v23 = vpop.permute.xlu2 %132 }
  0x76   : > { %891 = vset.pattern.permute.xlu0 %v946_v20  ;;  %880 = vset.pattern.permute.xlu2 %v945_v18 }
  0x77   : > { %879 = vset.pattern.permute.xlu1 %v945_v18  ;;  %471 = vperm.xlu0 %891, %v84_v14   ;;  %v809_v14 = vld [vmem:[%s1143_s30 + $0x68] sm:$0xff] }
  0x78   : > { %310 = vperm.xlu2 %880, %v995_v6   ;;  %307 = vperm.xlu1 %879, %v989_v3  }
  0x7c   : > { %v148_v26 = vpop.permute.xlu2 %147  ;;  %v98_v27 = vpop.permute.xlu1 %97 }
  0x7d   : > { %v92_v28 = vpop.permute.xlu0 %91  ;;  %vm118_vm8 = vcmp.eq.s32.totalorder %v98_v27, %v1050_v24  ;;  %vm119_vm9 = vcmp.eq.s32.totalorder %v98_v27, %v1058_v25 }
  0x7e   : > { %vm114_vm0 = vcmp.eq.s32.totalorder %v92_v28, %v1050_v24  ;;  %vm115_vm1 = vcmp.eq.s32.totalorder %v92_v28, %v1058_v25 }
  0x7f   : > { %v1062_v29 = vsel %vm114_vm0, %v133_v23, 0.0  ;;  %v1064_v30 = vsel %vm115_vm1, %v133_v23, 0.0  ;;  %411 = vperm.xlu0 %891, %v989_v3   ;;  %v803_v3 = vld [vmem:[%s1143_s30 + $0x38] sm:$0xff] }
  0x80   : > { %351 = vperm.xlu2 %880, %v1015_v12   ;;  %347 = vperm.xlu1 %879, %v1002_v7  }
  0x81   : > { %836 = vmatpush.bf16.msra.mxu2 %v803_v3  ;;  %618 = vmatpush.bf16.msra.mxu0 %v803_v3 }
  0x84   : > { %v163_v31 = vpop.permute.xlu2 %162  ;;  %v101_v32 = vpop.permute.xlu1 %100 }
  0x85   : > { %vm120_vm2 = vcmp.eq.s32.totalorder %v101_v32, %v1050_v24  ;;  %vm121_vm3 = vcmp.eq.s32.totalorder %v101_v32, %v1058_v25  ;;  %v95_v33 = vpop.permute.xlu0 %94 }
  0x86   : > { %v1071_v34 = vsel %vm120_vm2, %v148_v26, 0.0  ;;  %v1073_v35 = vsel %vm121_vm3, %v148_v26, 0.0  ;;  %vm116_vm6 = vcmp.eq.s32.totalorder %v95_v33, %v1050_v24  ;;  %vm117_vm7 = vcmp.eq.s32.totalorder %v95_v33, %v1058_v25 }
  0x87   : > { %455 = vperm.xlu0 %891, %v1015_v12  }
  0x88   : > { %882 = vset.pattern.permute.xlu2 %v946_v20  ;;  %881 = vset.pattern.permute.xlu1 %v946_v20 }
  0x89   : > { %451 = vperm.xlu2 %882, %v1002_v7   ;;  %414 = vperm.xlu1 %881, %v995_v6   ;;  %v802_v7 = vld [vmem:[%s1143_s30 + $0x30] sm:$0xff] }
  0x8a   : > { %837 = vmatpush.bf16.msra.mxu2 %v802_v7  ;;  %619 = vmatpush.bf16.msra.mxu0 %v802_v7 }
  0x8c   : > { %v113_v36 = vpop.permute.xlu1 %112 }
  0x8d   : > { %v110_v37 = vpop.permute.xlu0 %109  ;;  %v207_v38 = vpop.permute.xlu2 %206  ;;  %vm128_vm0 = vcmp.eq.s32.totalorder %v113_v36, %v1050_v24  ;;  %vm129_vm1 = vcmp.eq.s32.totalorder %v113_v36, %v1058_v25  ;;  %v798_v36 = vld [vmem:[%s1143_s30 + $0x10] sm:$0xff] }
  0x8e   : > { %vm126_vm4 = vcmp.eq.s32.totalorder %v110_v37, %v1050_v24  ;;  %vm127_vm5 = vcmp.eq.s32.totalorder %v110_v37, %v1058_v25  ;;  %vm228_vm14 = vcmp.eq.s32.totalorder %v207_v38, %v1050_v24  ;;  %vm229_vm15 = vcmp.eq.s32.totalorder %v207_v38, %v1058_v25  ;;  %v806_v37 = vld [vmem:[%s1143_s30 + $0x50] sm:$0xff] }
  0x8f   : > { %v1082_v39 = vsel %vm126_vm4, %v163_v31, 0.0  ;;  %v1084_v40 = vsel %vm127_vm5, %v163_v31, 0.0  ;;  %432 = vperm.xlu0 %891, %v1004_v8  }
  0x91   : > { %884 = vset.pattern.permute.xlu2 %v944_v17  ;;  %883 = vset.pattern.permute.xlu1 %v944_v17  ;;  %v808_v17 = vld [vmem:[%s1143_s30 + $0x60] sm:$0xff] }
  0x92   : > { %271 = vperm.xlu2 %884, %v1023_v16   ;;  %267 = vperm.xlu1 %883, %v1020_v13  }
  0x94   : > { %v143_v41 = vpop.permute.xlu1 %142 }
  0x95   : > { %v1095_v42 = vsel %vm118_vm8, %v143_v41, 0.0  ;;  %v1097_v43 = vsel %vm119_vm9, %v143_v41, 0.0  ;;  %v138_v44 = vpop.permute.xlu0 %137  ;;  %v1099_v45 = vpop.permute.xlu2 %215  ;;  %v797_v41 = vld [vmem:[%s1143_s30 + $0x8] sm:$0xff] }
  0x96   : > { %v172_v46 = vsel %vm116_vm6, %v138_v44, 0.0  ;;  %v173_v47 = vsel %vm117_vm7, %v138_v44, 0.0  ;;  %vm234_vm8 = vcmp.eq.s32.totalorder %v1099_v45, %v1050_v24  ;;  %vm235_vm9 = vcmp.eq.s32.totalorder %v1099_v45, %v1058_v25 }
  0x97   : > { %463 = vperm.xlu0 %891, %v1011_v10  }
  0x9a   : > { %885 = vset.pattern.permute.xlu1 %v945_v18  ;;  %886 = vset.pattern.permute.xlu2 %v945_v18 }
  0x9b   : > { %328 = vperm.xlu1 %885, %v1004_v8   ;;  %371 = vperm.xlu2 %886, %v1020_v13   ;;  %v810_v8 = vld [vmem:[%s1143_s30 + $0x70] sm:$0xff] }
  0x9c   : > { %v158_v48 = vpop.permute.xlu1 %157  ;;  %845 = vmatpush.bf16.msra.mxu3 %v810_v8  ;;  %648 = vmatpush.bf16.msra.mxu1 %v810_v8 }
  0x9d   : > { %v1114_v49 = vsel %vm124_vm10, %v158_v48, 0.0  ;;  %v1116_v50 = vsel %vm125_vm11, %v158_v48, 0.0  ;;  %v153_v51 = vpop.permute.xlu0 %152  ;;  %v1118_v52 = vpop.permute.xlu2 %221 }
  0x9e   : > { %v1120_v53 = vsel %vm122_vm12, %v153_v51, 0.0  ;;  %v1122_v54 = vsel %vm123_vm13, %v153_v51, 0.0 }
  0xa0   : > { %846 = vmatpush.bf16.msra.mxu3 %v809_v14  ;;  %649 = vmatpush.bf16.msra.mxu1 %v809_v14 }
  0xa3   : > { %375 = vperm.xlu1 %885, %v1023_v16   ;;  %887 = vset.pattern.permute.xlu2 %v946_v20 }
  0xa4   : > { %429 = vperm.xlu2 %887, %v1006_v9   ;;  %847 = vmatpush.bf16.msra.mxu3 %v808_v17 }
  0xa5   : > { %v168_v55 = vpop.permute.xlu0 %167  ;;  %v248_v56 = vpop.permute.xlu2 %247  ;;  %650 = vmatpush.bf16.msra.mxu1 %v808_v17 }
  0xa6   : > { %v1132_v57 = vsel %vm128_vm0, %v168_v55, 0.0  ;;  %v1134_v58 = vsel %vm129_vm1, %v168_v55, 0.0  ;;  %v276_v59 = vsel %vm228_vm14, %v248_v56, 0.0  ;;  %v277_v60 = vsel %vm229_vm15, %v248_v56, 0.0  ;;  %v204_v61 = vpop.permute.xlu1 %203 }
  0xa7   : > { %v1136_v62 = vadd.f32 %v276_v59, %v172_v46  ;;  %v1138_v63 = vadd.f32 %v277_v60, %v173_v47  ;;  %vm226_vm4 = vcmp.eq.s32.totalorder %v204_v61, %v1050_v24  ;;  %vm227_vm5 = vcmp.eq.s32.totalorder %v204_v61, %v1058_v25 }
  0xab   : > { %888 = vset.pattern.permute.xlu1 %v946_v20 }
  0xac   : > { %475 = vperm.xlu1 %888, %v1020_v13   ;;  %479 = vperm.xlu2 %887, %v1023_v16   ;;  %v801_v13 = vld [vmem:[%s1143_s30 + $0x28] sm:$0xff]  ;;  %v800_v16 = vld [vmem:[%s1143_s30 + $0x20] sm:$0xff] }
  0xad   : > { %v1152_v6 = vpop.permute.xlu2 %259  ;;  %838 = vmatpush.bf16.msra.mxu2 %v801_v13  ;;  %620 = vmatpush.bf16.msra.mxu0 %v801_v13 }
  0xae   : > { %v1148_v0 = vpop.permute.xlu1 %212  ;;  %v210_v1 = vpop.permute.xlu0 %209  ;;  %v282_v56 = vsel %vm234_vm8, %v1152_v6, 0.0  ;;  %v283_v59 = vsel %vm235_vm9, %v1152_v6, 0.0 }
  0xaf   : > { %vm230_vm2 = vcmp.eq.s32.totalorder %v210_v1, %v1050_v24  ;;  %vm231_vm3 = vcmp.eq.s32.totalorder %v210_v1, %v1058_v25  ;;  %vm232_vm6 = vcmp.eq.s32.totalorder %v1148_v0, %v1050_v24  ;;  %vm233_vm7 = vcmp.eq.s32.totalorder %v1148_v0, %v1058_v25 }
  0xb0   : > { %v298_v0 = vadd.f32 %v282_v56, %v1120_v53  ;;  %v299_v1 = vadd.f32 %v283_v59, %v1122_v54 }
  0xb1   : > { %839 = vmatpush.bf16.msra.mxu2 %v800_v16  ;;  %621 = vmatpush.bf16.msra.mxu0 %v800_v16 }
  0xb4   : > { %889 = vset.pattern.permute.xlu1 %v945_v18  ;;  %890 = vset.pattern.permute.xlu2 %v945_v18 }
  0xb5   : > { %313 = vperm.xlu1 %889, %v987_v2   ;;  %316 = vperm.xlu2 %890, %v993_v5  }
  0xb6   : > { %v1160_v9 = vpop.permute.xlu1 %218  ;;  %v1162_v12 = vpop.permute.xlu0 %224  ;;  %840 = vmatpush.bf16.msra.mxu2 %v799_v21  ;;  %622 = vmatpush.bf16.msra.mxu0 %v799_v21 }
  0xb7   : > { %v1166_v15 = vpop.permute.xlu2 %322  ;;  %vm236_vm12 = vcmp.eq.s32.totalorder %v1160_v9, %v1050_v24  ;;  %vm237_vm13 = vcmp.eq.s32.totalorder %v1160_v9, %v1058_v25 }
  0xb8   : > { %vm340_vm14 = vcmp.eq.s32.totalorder %v1166_v15, %v1050_v24  ;;  %vm341_vm15 = vcmp.eq.s32.totalorder %v1166_v15, %v1058_v25 }
  0xba   : > { %841 = vmatpush.bf16.msra.mxu2 %v798_v36  ;;  %623 = vmatpush.bf16.msra.mxu0 %v798_v36 }
  0xbd   : > { %359 = vperm.xlu1 %889, %v1011_v10   ;;  %892 = vset.pattern.permute.xlu2 %v946_v20  ;;  %v807_v10 = vld [vmem:[%s1143_s30 + $0x58] sm:$0xff] }
  0xbe   : > { %v244_v18 = vpop.permute.xlu1 %243  ;;  %v252_v19 = vpop.permute.xlu0 %251  ;;  %417 = vperm.xlu2 %892, %v987_v2   ;;  %848 = vmatpush.bf16.msra.mxu3 %v807_v10 }
  0xbf   : > { %v274_v22 = vsel %vm226_vm4, %v244_v18, 0.0  ;;  %v275_v23 = vsel %vm227_vm5, %v244_v18, 0.0  ;;  %v278_v26 = vsel %vm230_vm2, %v252_v19, 0.0  ;;  %v279_v27 = vsel %vm231_vm3, %v252_v19, 0.0  ;;  %651 = vmatpush.bf16.msra.mxu1 %v807_v10  ;;  %842 = vmatpush.bf16.msra.mxu2 %v797_v41 }
  0xc0   : > { %v1180_v28 = vadd.f32 %v274_v22, %v1062_v29  ;;  %v1183_v31 = vadd.f32 %v275_v23, %v1064_v30  ;;  %v1186_v32 = vadd.f32 %v278_v26, %v1095_v42  ;;  %v1189_v2 = vadd.f32 %v279_v27, %v1097_v43  ;;  %v1191_v33 = vpop.permute.xlu2 %423  ;;  %v805_v42 = vld [vmem:[%s1143_s30 + $0x48] sm:$0xff]  ;;  %624 = vmatpush.bf16.msra.mxu0 %v797_v41 }
  0xc1   : > { %vm442_vm0 = vcmp.eq.s32.totalorder %v1191_v33, %v1050_v24  ;;  %vm443_vm1 = vcmp.eq.s32.totalorder %v1191_v33, %v1058_v25  ;;  %vm240_vm4 = vcmp.eq.s32.totalorder %v1162_v12, %v1050_v24  ;;  %vm241_vm5 = vcmp.eq.s32.totalorder %v1162_v12, %v1058_v25 }
  0xc2   : > { %849 = vmatpush.bf16.msra.mxu3 %v806_v37 }
  0xc3   : > { %652 = vmatpush.bf16.msra.mxu1 %v806_v37 }
  0xc5   : > { %893 = vset.pattern.permute.xlu1 %v946_v20 }
  0xc6   : > { %420 = vperm.xlu1 %893, %v993_v5   ;;  %v256_v29 = vpop.permute.xlu1 %255  ;;  %459 = vperm.xlu2 %892, %v1013_v11   ;;  %v264_v44 = vpop.permute.xlu0 %263  ;;  %v796_v5 = vld [vmem:[%s1143_s30] sm:$0xff] }
  0xc7   : > { %v280_v30 = vsel %vm232_vm6, %v256_v29, 0.0  ;;  %v281_v38 = vsel %vm233_vm7, %v256_v29, 0.0  ;;  %850 = vmatpush.bf16.msra.mxu3 %v805_v42  ;;  %v804_v11 = vld [vmem:[%s1143_s30 + $0x40] sm:$0xff]  ;;  %653 = vmatpush.bf16.msra.mxu1 %v805_v42  ;;  %v284_v3 = vsel %vm236_vm12, %v264_v44, 0.0  ;;  %v285_v4 = vsel %vm237_vm13, %v264_v44, 0.0 }
  0xc8   : > { %v1205_v20 = vadd.f32 %v280_v30, %v1071_v34  ;;  %v1208_v43 = vadd.f32 %v281_v38, %v1073_v35  ;;  %v468_v46 = vpop.permute.xlu2 %467  ;;  %843 = vmatpush.bf16.msra.mxu2 %v796_v5  ;;  %625 = vmatpush.bf16.msra.mxu0 %v796_v5  ;;  %v300_v8 = vadd.f32 %v284_v3, %v1114_v49 }
  0xc9   : > { %v301_v9 = vadd.f32 %v285_v4, %v1116_v50  ;;  %v490_v16 = vsel %vm442_vm0, %v468_v46, 0.0  ;;  %v491_v17 = vsel %vm443_vm1, %v468_v46, 0.0 }
  0xcb   : > { %851 = vmatpush.bf16.msra.mxu3 %v804_v11  ;;  %654 = vmatpush.bf16.msra.mxu1 %v804_v11 }
  0xcf   : > { %v320_v47 = vpop.permute.xlu1 %319 }
  0xd0   : > { %v364_v48 = vpop.permute.xlu0 %363  ;;  %vm338_vm10 = vcmp.eq.s32.totalorder %v320_v47, %v1050_v24  ;;  %vm339_vm11 = vcmp.eq.s32.totalorder %v320_v47, %v1058_v25 }
  0xd1   : > { %v386_v6 = vsel %vm338_vm10, %v364_v48, 0.0  ;;  %v387_v7 = vsel %vm339_vm11, %v364_v48, 0.0 }
  0xd2   : > { %v1212_v34 = vpop.permute.xlu2 %310  ;;  %v402_v13 = vadd.f32 %v386_v6, %v298_v0  ;;  %v403_v14 = vadd.f32 %v387_v7, %v299_v1 }
  0xd3   : > { %vm332_vm6 = vcmp.eq.s32.totalorder %v1212_v34, %v1050_v24  ;;  %vm333_vm7 = vcmp.eq.s32.totalorder %v1212_v34, %v1058_v25 }
  0xd4   : > { %v506_v10 = vadd.f32 %v490_v16, %v402_v13  ;;  %v507_v49 = vadd.f32 %v491_v17, %v403_v14 }
  0xd7   : > { %v368_v35 = vpop.permute.xlu1 %367 }
  0xd8   : > { %v1214_v51 = vpop.permute.xlu0 %325  ;;  %v388_v53 = vsel %vm340_vm14, %v368_v35, 0.0  ;;  %v389_v54 = vsel %vm341_vm15, %v368_v35, 0.0  ;;  %vm238_vm14 = vcmp.eq.s32.totalorder %v1118_v52, %v1050_v24  ;;  %vm239_vm15 = vcmp.eq.s32.totalorder %v1118_v52, %v1058_v25 }
  0xd9   : > { %v404_v18 = vadd.f32 %v388_v53, %v300_v8  ;;  %v405_v19 = vadd.f32 %v389_v54, %v301_v9  ;;  %vm342_vm0 = vcmp.eq.s32.totalorder %v1214_v51, %v1050_v24  ;;  %vm343_vm1 = vcmp.eq.s32.totalorder %v1214_v51, %v1058_v25 }
  0xda   : > { %v1216_v55 = vpop.permute.xlu2 %351 }
  0xe0   : > { %v1224_v60 = vpop.permute.xlu0 %355 }
  0xe1   : > { %v427_v61 = vpop.permute.xlu1 %426 }
  0xe2   : > { %vm444_vm2 = vcmp.eq.s32.totalorder %v427_v61, %v1050_v24  ;;  %vm445_vm3 = vcmp.eq.s32.totalorder %v427_v61, %v1058_v25 }
  0xe3   : > { %v452_v45 = vpop.permute.xlu2 %451 }
  0xe9   : > { %v472_v15 = vpop.permute.xlu0 %471 }
  0xea   : > { %v492_v21 = vsel %vm444_vm2, %v472_v15, 0.0  ;;  %v493_v22 = vsel %vm445_vm3, %v472_v15, 0.0  ;;  %v308_v23 = vpop.permute.xlu1 %307 }
  0xeb   : > { %v508_v26 = vadd.f32 %v492_v21, %v404_v18  ;;  %v509_v27 = vadd.f32 %v493_v22, %v405_v19  ;;  %vm330_vm8 = vcmp.eq.s32.totalorder %v308_v23, %v1050_v24  ;;  %vm331_vm9 = vcmp.eq.s32.totalorder %v308_v23, %v1058_v25 }
  0xec   : > { %v272_v50 = vpop.permute.xlu2 %271 }
  0xed   : > { %v288_v33 = vsel %vm240_vm4, %v272_v50, 0.0  ;;  %v289_v36 = vsel %vm241_vm5, %v272_v50, 0.0  ;;  %v518_v37 = vpack.c.bf16 %v508_v26, %v506_v10  ;;  %v519_v29 = vpack.c.bf16 %v509_v27, %v507_v49 }
  0xee   : > { %v304_v30 = vadd.f32 %v288_v33, %v1132_v57  ;;  %v305_v38 = vadd.f32 %v289_v36, %v1134_v58  ;;  %v380_v57 = vsel %vm332_vm6, %v1216_v55, 0.0  ;;  %v381_v58 = vsel %vm333_vm7, %v1216_v55, 0.0 }
  0xef   : > { %636 = vmatmul.bf16.vlgmr.msra.gmra.mxu2 %v518_v37  ;;  %665 = vmatmul.bf16.vlgmr.msra.gmra.mxu3 %v519_v29  ;;  %v396_v35 = vadd.f32 %v380_v57, %v1136_v62  ;;  %v397_v56 = vadd.f32 %v381_v58, %v1138_v63 }
  0xf1   : > { %v412_v41 = vpop.permute.xlu0 %411 }
  0xf2   : > { %v348_v42 = vpop.permute.xlu1 %347  ;;  %vm434_vm10 = vcmp.eq.s32.totalorder %v412_v41, %v1050_v24  ;;  %vm435_vm11 = vcmp.eq.s32.totalorder %v412_v41, %v1058_v25 }
  0xf3   : > { %v378_v12 = vsel %vm330_vm8, %v348_v42, 0.0  ;;  %v379_v44 = vsel %vm331_vm9, %v348_v42, 0.0  ;;  %v482_v47 = vsel %vm434_vm10, %v452_v45, 0.0  ;;  %v483_v48 = vsel %vm435_vm11, %v452_v45, 0.0 }
  0xf4   : > { %v394_v46 = vadd.f32 %v378_v12, %v1180_v28  ;;  %v395_v5 = vadd.f32 %v379_v44, %v1183_v31 }
  0xf5   : > { %v372_v45 = vpop.permute.xlu2 %371 }
  0xf6   : > { %v498_v1 = vadd.f32 %v482_v47, %v394_v46  ;;  %v499_v28 = vadd.f32 %v483_v48, %v395_v5  ;;  %v390_v53 = vsel %vm342_vm0, %v372_v45, 0.0  ;;  %v391_v54 = vsel %vm343_vm1, %v372_v45, 0.0 }
  0xf9   : > { %v456_v11 = vpop.permute.xlu0 %455 }
  0xfb   : > { %v415_v34 = vpop.permute.xlu1 %414 }
  0xfc   : > { %vm436_vm12 = vcmp.eq.s32.totalorder %v415_v34, %v1050_v24  ;;  %vm437_vm13 = vcmp.eq.s32.totalorder %v415_v34, %v1058_v25 }
  0xfd   : > { %v484_v59 = vsel %vm436_vm12, %v456_v11, 0.0  ;;  %v485_v61 = vsel %vm437_vm13, %v456_v11, 0.0 }
  0xfe   : > { %v500_v0 = vadd.f32 %v484_v59, %v396_v35  ;;  %v501_v55 = vadd.f32 %v485_v61, %v397_v56  ;;  %v430_v13 = vpop.permute.xlu2 %429 }
  0xff   : > { %vm446_vm6 = vcmp.eq.s32.totalorder %v430_v13, %v1050_v24  ;;  %vm447_vm7 = vcmp.eq.s32.totalorder %v430_v13, %v1058_v25 }
 0x100   : > { %v514_v3 = vpack.c.bf16 %v500_v0, %v498_v1  ;;  %v515_v31 = vpack.c.bf16 %v501_v55, %v499_v28 }
 0x101   : > { %v433_v51 = vpop.permute.xlu0 %432 }
 0x102   : > { %626 = vmatmul.bf16.vlgmr.msra.gmra.mxu0 %v514_v3  ;;  %655 = vmatmul.bf16.vlgmr.msra.gmra.mxu1 %v515_v31  ;;  %vm448_vm4 = vcmp.eq.s32.totalorder %v433_v51, %v1050_v24  ;;  %vm449_vm5 = vcmp.eq.s32.totalorder %v433_v51, %v1058_v25 }
 0x104   : > { %v268_v62 = vpop.permute.xlu1 %267 }
 0x105   : > { %v286_v63 = vsel %vm238_vm14, %v268_v62, 0.0  ;;  %v287_v4 = vsel %vm239_vm15, %v268_v62, 0.0 }
 0x106   : > { %v302_v6 = vadd.f32 %v286_v63, %v1082_v39  ;;  %v303_v7 = vadd.f32 %v287_v4, %v1084_v40  ;;  %v480_v16 = vpop.permute.xlu2 %479 }
 0x107   : > { %v496_v19 = vsel %vm448_vm4, %v480_v16, 0.0  ;;  %v497_v15 = vsel %vm449_vm5, %v480_v16, 0.0 }
 0x108   : > { %v406_v8 = vadd.f32 %v390_v53, %v302_v6  ;;  %v407_v9 = vadd.f32 %v391_v54, %v303_v7 }
 0x109   : > { %v464_v11 = vpop.permute.xlu0 %463 }
 0x10d   : > { %v329_v14 = vpop.permute.xlu1 %328 }
 0x10e   : > { %vm344_vm2 = vcmp.eq.s32.totalorder %v329_v14, %v1050_v24  ;;  %vm345_vm3 = vcmp.eq.s32.totalorder %v329_v14, %v1058_v25 }
 0x10f   : > { %v317_v50 = vpop.permute.xlu2 %316 }
 0x110   : > { %vm336_vm10 = vcmp.eq.s32.totalorder %v317_v50, %v1050_v24  ;;  %vm337_vm11 = vcmp.eq.s32.totalorder %v317_v50, %v1058_v25 }
 0x115   : > { %v376_v52 = vpop.permute.xlu1 %375 }
 0x116   : > { %v392_v17 = vsel %vm344_vm2, %v376_v52, 0.0  ;;  %v393_v18 = vsel %vm345_vm3, %v376_v52, 0.0 }
 0x117   : > { %v408_v39 = vadd.f32 %v392_v17, %v304_v30  ;;  %v409_v40 = vadd.f32 %v393_v18, %v305_v38 }
 0x118   : > { %v418_v42 = vpop.permute.xlu2 %417 }
 0x119   : > { %v512_v10 = vadd.f32 %v496_v19, %v408_v39  ;;  %v513_v49 = vadd.f32 %v497_v15, %v409_v40  ;;  %vm438_vm12 = vcmp.eq.s32.totalorder %v418_v42, %v1050_v24  ;;  %vm439_vm13 = vcmp.eq.s32.totalorder %v418_v42, %v1058_v25 }
 0x11e   : > { %v476_v21 = vpop.permute.xlu1 %475 }
 0x11f   : > { %v494_v22 = vsel %vm446_vm6, %v476_v21, 0.0  ;;  %v495_v23 = vsel %vm447_vm7, %v476_v21, 0.0 }
 0x120   : > { %v510_v26 = vadd.f32 %v494_v22, %v406_v8  ;;  %v511_v27 = vadd.f32 %v495_v23, %v407_v9  ;;  %v460_v44 = vpop.permute.xlu2 %459 }
 0x121   : > { %v486_v46 = vsel %vm438_vm12, %v460_v44, 0.0  ;;  %v487_v5 = vsel %vm439_vm13, %v460_v44, 0.0 }
 0x122   : > { %v520_v33 = vpack.c.bf16 %v512_v10, %v510_v26  ;;  %v521_v36 = vpack.c.bf16 %v513_v49, %v511_v27 }
 0x124   : > { %641 = vmatmul.bf16.gmra.mxu2 %v520_v33  ;;  %670 = vmatmul.bf16.gmra.mxu3 %v521_v36 }
 0x127   : > { %v314_v37 = vpop.permute.xlu1 %313 }
 0x128   : > { %vm334_vm8 = vcmp.eq.s32.totalorder %v314_v37, %v1050_v24  ;;  %vm335_vm9 = vcmp.eq.s32.totalorder %v314_v37, %v1058_v25 }
 0x129   : > { %v382_v29 = vsel %vm334_vm8, %v1224_v60, 0.0  ;;  %v383_v30 = vsel %vm335_vm9, %v1224_v60, 0.0 }
 0x12a   : > { %v398_v38 = vadd.f32 %v382_v29, %v1186_v32  ;;  %v399_v41 = vadd.f32 %v383_v30, %v1189_v2 }
 0x12c   : > { %v502_v34 = vadd.f32 %v486_v46, %v398_v38  ;;  %v503_v35 = vadd.f32 %v487_v5, %v399_v41 }
 0x12f   : > { %v360_v12 = vpop.permute.xlu1 %359 }
 0x130   : > { %v384_v57 = vsel %vm336_vm10, %v360_v12, 0.0  ;;  %v385_v58 = vsel %vm337_vm11, %v360_v12, 0.0 }
 0x131   : > { %v400_v32 = vadd.f32 %v384_v57, %v1205_v20  ;;  %v401_v2 = vadd.f32 %v385_v58, %v1208_v43 }
 0x138   : > { %v421_v60 = vpop.permute.xlu1 %420 }
 0x139   : > { %vm440_vm14 = vcmp.eq.s32.totalorder %v421_v60, %v1050_v24  ;;  %vm441_vm15 = vcmp.eq.s32.totalorder %v421_v60, %v1058_v25 }
 0x13a   : > { %v488_v47 = vsel %vm440_vm14, %v464_v11, 0.0  ;;  %v489_v48 = vsel %vm441_vm15, %v464_v11, 0.0 }
 0x13b   : > { %v504_v56 = vadd.f32 %v488_v47, %v400_v32  ;;  %v505_v59 = vadd.f32 %v489_v48, %v401_v2 }
 0x13d   : > { %v516_v61 = vpack.c.bf16 %v504_v56, %v502_v34  ;;  %v517_v0 = vpack.c.bf16 %v505_v59, %v503_v35 }
 0x13f   : > { %631 = vmatmul.bf16.gmra.mxu0 %v516_v61  ;;  %660 = vmatmul.bf16.gmra.mxu1 %v517_v0 }
 0x172   : > { %v637_v55 = vpop.f32.mrf.mxu2  ;;  %v666_v1 = vpop.f32.mrf.mxu3 }
 0x173   : > { %v667_v43 = vadd.f32 %v666_v1, %v637_v55 }
 0x17a   : > { %v639_v20 = vpop.f32.mrf.mxu2  ;;  %v668_v28 = vpop.f32.mrf.mxu3 }
 0x17b   : > { %v669_v3 = vadd.f32 %v668_v28, %v639_v20 }
 0x17d   : > { %v826_v24 = vpack.c.bf16 %v669_v3, %v667_v43 }
 0x17f   : > { %834 = vst [vmem:[%s686_s6 + $0x10] sm:$0xff] %v826_v24   ;;  %v627_v25 = vpop.f32.mrf.mxu0  ;;  %v656_v31 = vpop.f32.mrf.mxu1 }
 0x180   : > { %v657_v63 = vadd.f32 %v656_v31, %v627_v25 }
 0x187   : > { %v629_v45 = vpop.f32.mrf.mxu0  ;;  %v658_v62 = vpop.f32.mrf.mxu1 }
 0x188   : > { %v659_v4 = vadd.f32 %v658_v62, %v629_v45 }
 0x18a   : > { %v816_v6 = vpack.c.bf16 %v659_v4, %v657_v63 }
 0x18c   : > { %817 = vst [vmem:[%s686_s6] sm:$0xff] %v816_v6  }
 0x1a7   : > { %v642_v7 = vpop.f32.mrf.mxu2  ;;  %v671_v53 = vpop.f32.mrf.mxu3 }
 0x1a8   : > { %v672_v9 = vadd.f32 %v671_v53, %v642_v7 }
 0x1af   : > { %v644_v54 = vpop.f32.mrf.mxu2  ;;  %v673_v8 = vpop.f32.mrf.mxu3 }
 0x1b0   : > { %v674_v13 = vadd.f32 %v673_v8, %v644_v54 }
 0x1b2   : > { %v831_v14 = vpack.c.bf16 %v674_v13, %v672_v9 }
 0x1b4   : > { %835 = vst [vmem:[%s686_s6 + $0x18] sm:$0xff] %v831_v14  }
 0x1bc   : > { %v632_v52 = vpop.f32.mrf.mxu0  ;;  %v661_v16 = vpop.f32.mrf.mxu1 }
 0x1bd   : > { %v662_v18 = vadd.f32 %v661_v16, %v632_v52 }
 0x1c4   : > { %v634_v51 = vpop.f32.mrf.mxu0  ;;  %v663_v17 = vpop.f32.mrf.mxu1 }
 0x1c5   : > { %v664_v39 = vadd.f32 %v663_v17, %v634_v51  ;;  %28 = sbr.rel (!%p26_p0) target bundleno = 7 (0x7), region = 43 }
 0x1c7   : > { %v821_v40 = vpack.c.bf16 %v664_v39, %v662_v18 }
 0x1c9   : > { %833 = vst [vmem:[%s686_s6 + $0x8] sm:$0xff] %v821_v40  }
 0x1ca   :  { %707 = dma.vmem_to_hbm [thread:$0]  %s700_s11, 8192, %s702_s9, [#allocation5], %s948_s12, %s948_s12, %s949_s13  }
 0x1cb   :  { %936 = dma.done.wait [#allocation5], 8192  }
 0x1cc   :  { %937 = vsyncadd [#allocation5], 4294959104 }
 0x1cd   :  { %712 = vsyncpa [#allocation5], 1 }

</bundles_post_ra>
